<compile_context>
chip_gen: v5e
topology: v5e:2x2
jax: 0.10.0
libtpu: 0.0.40
codegen_flags: <defaults>
</compile_context>

<pallas_src>
import functools

import jax
import jax.numpy as jnp
import numpy as np
from jax import lax
from jax.experimental import pallas as pl
from jax.experimental.pallas import tpu as pltpu


def _round_up(x, m):
    return pl.cdiv(x, m) * m


def _vmem_budget_bytes():
    # ~75% of physical VMEM: v5e/v6e 128 MiB -> 96 MiB, v7x 64 MiB -> 48 MiB.
    try:
        cap = int(pltpu.get_tpu_info().vmem_capacity_bytes)
    except Exception:
        cap = 128 * 1024 * 1024
    return (cap // 4) * 3


def _embedding_bag_mean_kernel(*refs, bag_block, gather_first):
    # refs layout (gather_first=False): w, ids, len, out[, acc]
    # refs layout (gather_first=True):  w, ids, col, len, out[, acc]
    if gather_first:
        w_ref, ids_ref, col_ref, len_ref, out_ref, *scratch = refs
    else:
        w_ref, ids_ref, len_ref, out_ref, *scratch = refs
        col_ref = None
    # f32 outputs accumulate straight into the (j-resident) output block.
    acc_ref = scratch[0] if scratch else out_ref

    j = pl.program_id(1)

    @pl.when(j == 0)
    def _init():
        acc_ref[...] = jnp.zeros_like(acc_ref)

    w = w_ref[...]                       # (V_pad, D_pad) native dtype, pre-renormed
    feats = ids_ref[0:1, :]              # (1, TF) int32 feature ids (pad -> 0)
    bags = ids_ref[1:2, :]               # (1, TF) int32 bag ids     (pad -> -1)
    tf = feats.shape[1]
    v_pad = w.shape[0]
    mm_dtype = w.dtype                   # bf16 table -> bf16 MXU inputs

    # A[b, t] = 1 iff feature t of this chunk belongs to bag (bag_base + b).
    bag_base = pl.program_id(0) * bag_block
    row_ids = lax.broadcasted_iota(jnp.int32, (bag_block, tf), 0) + bag_base
    a_mat = (row_ids == bags).astype(mm_dtype)               # (TB, TF)

    if gather_first:
        # Large-V order: gather rows first (TF,V)x(V,D), then pool (TB,TF)x(TF,D).
        col = col_ref[...]                                    # (TF, 1) int32
        vocab_ids = lax.broadcasted_iota(jnp.int32, (tf, v_pad), 1)
        sel = (vocab_ids == col).astype(mm_dtype)             # (TF, V)
        g = jnp.dot(sel, w, preferred_element_type=jnp.float32)     # (TF, D)
        acc_ref[...] += jnp.dot(a_mat, g.astype(mm_dtype),
                                preferred_element_type=jnp.float32)
    else:
        # Small-V order: bag-by-vocab histogram, then (TB,V)x(V,D).
        vocab_ids = lax.broadcasted_iota(jnp.int32, (v_pad, tf), 0)
        sel = (vocab_ids == feats).astype(mm_dtype)           # (V, TF)
        # Contract the feature axis (last of both operands -> no transposes).
        p = lax.dot_general(a_mat, sel,
                            dimension_numbers=(((1,), (1,)), ((), ())),
                            preferred_element_type=jnp.float32)     # (TB, V)
        acc_ref[...] += jnp.dot(p.astype(mm_dtype), w,
                                preferred_element_type=jnp.float32)

    @pl.when(j == pl.num_programs(1) - 1)
    def _finalize():
        # Lengths are precomputed, clamped >= 1 on the host (empty bags -> 0 out).
        inv = pl.reciprocal(len_ref[...], approx=False)       # (TB, 1)
        out_ref[...] = (acc_ref[...] * inv).astype(out_ref.dtype)


def featurized_embedding_forward(weight, data, offsets, *, max_norm=None,
                                 bag_block=256, feat_block=1024,
                                 gather_first=None):
    """Pallas equivalent of FeaturizedEmbedding.forward / .get.

    weight : (V, D) float embedding table.
    data   : (T,) int feature ids (flat concatenation of per-entity bags).
    offsets: (B + 1,) int bag boundaries; bag b is data[offsets[b]:offsets[b+1]].
    """
    v, d = weight.shape
    b = int(offsets.shape[0]) - 1
    if b == 0:                                   # module's empty-input branch
        return jnp.zeros((0, d), weight.dtype)
    t = int(data.shape[0])
    if t == 0:                                   # all bags empty -> zeros
        return jnp.zeros((b, d), weight.dtype)

    w_dtype = weight.dtype
    wsize = jnp.dtype(w_dtype).itemsize
    need_acc = jnp.dtype(w_dtype) != jnp.dtype(jnp.float32)

    # --- hoisted, once-per-call table preprocessing (runs in XLA, not per step) ---
    w_f = weight.astype(jnp.float32)
    if max_norm is not None:
        # F.embedding_bag(max_norm=...): clamp row L2 norms to max_norm.
        # (Forward-only: the in-place renorm side effect on `weight` and the
        #  sparse-gradient behavior are not reproduced.)
        norm = jnp.sqrt(jnp.sum(w_f * w_f, axis=-1, keepdims=True))
        w_f = w_f * jnp.minimum(1.0, max_norm / jnp.maximum(norm, 1e-7))
    w_scaled = w_f.astype(w_dtype)               # back to native dtype for the MXU

    v_pad = _round_up(v, 8)
    d_pad = _round_up(d, 128)

    # Tile sizes: keep >= 2 bag blocks when possible (v7x has 2 TensorCores).
    tb = min(bag_block, _round_up(max((b + 1) // 2, 1), 8))
    tf = min(feat_block, _round_up(t, 128))

    budget = _vmem_budget_bytes()

    def vmem_estimate(tb_, tf_):
        return (v_pad * d_pad * wsize                  # resident table (single buffer)
                + 2 * tb_ * d_pad * wsize              # double-buffered output tiles
                + (tb_ * d_pad * 4 if need_acc else 0)  # f32 accumulator (bf16 out only)
                + 2 * 8 * tf_ * 4                      # ids chunk (sublane-padded)
                + 2 * tf_ * 128 * 4                    # column ids (lane-padded, worst case)
                + 2 * tb_ * 128 * 4                    # per-bag lengths (lane-padded)
                + (2 << 20))                           # Mosaic internal scratch headroom
    while vmem_estimate(tb, tf) > budget and tf > 128:
        tf = max(128, _round_up(tf // 2, 128))
    while vmem_estimate(tb, tf) > budget and tb > 8:
        tb = max(8, _round_up(tb // 2, 8))
    # TODO(synk): if the padded table alone exceeds the VMEM budget (huge
    # vocabularies), switch to a sorted/grouped DMA-gather path instead of the
    # VMEM-resident one-hot design.

    b_pad = _round_up(b, tb)
    t_pad = _round_up(t, tf)
    num_chunks = t_pad // tf

    # Pooling order gate: pick the association with fewer MXU FLOPs per step.
    if gather_first is None:
        flops_hist = tb * tf * v_pad + tb * v_pad * d_pad
        flops_gath = tf * v_pad * d_pad + tb * tf * d_pad
        gather_first = flops_gath < flops_hist

    # --- host-side (XLA) input preparation ---
    w_p = jnp.pad(w_scaled, ((0, v_pad - v), (0, d_pad - d)))

    data_i = data.astype(jnp.int32)
    bag_ids = (jnp.searchsorted(offsets.astype(jnp.int32),
                                jnp.arange(t, dtype=jnp.int32),
                                side="right") - 1).astype(jnp.int32)
    data_p = jnp.pad(data_i, (0, t_pad - t))                       # pad ids -> 0
    bags_p = jnp.pad(bag_ids, (0, t_pad - t), constant_values=-1)  # pad bags -> -1
    ids_p = jnp.stack([data_p.reshape(num_chunks, tf),
                       bags_p.reshape(num_chunks, tf)], axis=1)    # (nc, 2, TF)
    col_p = data_p.reshape(t_pad, 1) if gather_first else None     # (T_pad, 1)

    lengths = jnp.maximum((offsets[1:] - offsets[:-1]).astype(jnp.float32), 1.0)
    len_p = jnp.pad(lengths, (0, b_pad - b), constant_values=1.0).reshape(b_pad, 1)

    kernel = functools.partial(_embedding_bag_mean_kernel,
                               bag_block=tb, gather_first=gather_first)

    def _run(single_buffer_weight):
        if single_buffer_weight:
            # Constant index_map -> DMA already elided after step 0; a second
            # pipeline buffer for the table is pure VMEM waste.
            w_spec = pl.BlockSpec((v_pad, d_pad), lambda i, j: (0, 0),
                                  pipeline_mode=pl.Buffered(1))
        else:
            w_spec = pl.BlockSpec((v_pad, d_pad), lambda i, j: (0, 0))
        in_specs = [w_spec,
                    pl.BlockSpec((None, 2, tf), lambda i, j: (j, 0, 0))]
        args = [w_p, ids_p]
        if gather_first:
            in_specs.append(pl.BlockSpec((tf, 1), lambda i, j: (j, 0)))
            args.append(col_p)
        in_specs.append(pl.BlockSpec((tb, 1), lambda i, j: (i, 0)))
        args.append(len_p)
        scratch = [pltpu.VMEM((tb, d_pad), jnp.float32)] if need_acc else []
        return pl.pallas_call(
            kernel,
            out_shape=jax.ShapeDtypeStruct((b_pad, d_pad), w_dtype),
            grid_spec=pltpu.PrefetchScalarGridSpec(
                num_scalar_prefetch=0,
                grid=(b_pad // tb, num_chunks),
                in_specs=in_specs,
                out_specs=pl.BlockSpec((tb, d_pad), lambda i, j: (i, 0)),
                scratch_shapes=scratch),
            compiler_params=pltpu.CompilerParams(
                dimension_semantics=("parallel", "arbitrary"),
                vmem_limit_bytes=budget),
        )(*args)

    try:
        out_pad = _run(True)
    except Exception:
        # pl.Buffered(1) pipeline mode unavailable on this jax/libtpu: fall back
        # to the default double-buffered (still correct, just more VMEM).
        out_pad = _run(False)

    return out_pad[:b, :d]


def _reference(weight, data, offsets, max_norm=None):
    """Pure-JAX embedding_bag(mean) reference."""
    b = int(offsets.shape[0]) - 1
    d = weight.shape[1]
    w = weight.astype(jnp.float32)
    if max_norm is not None:
        norm = jnp.sqrt(jnp.sum(w * w, axis=-1, keepdims=True))
        w = w * jnp.minimum(1.0, max_norm / jnp.maximum(norm, 1e-7))
    w = w.astype(weight.dtype).astype(jnp.float32)   # match kernel's native-dtype table
    lengths = offsets[1:] - offsets[:-1]
    bag_ids = jnp.repeat(jnp.arange(b, dtype=jnp.int32), lengths,
                         total_repeat_length=data.shape[0])
    sums = jnp.zeros((b, d), jnp.float32).at[bag_ids].add(w[data])
    counts = jnp.maximum(lengths.astype(jnp.float32), 1.0)
    return (sums / counts[:, None]).astype(weight.dtype)


if __name__ == "__main__":
    key = jax.random.PRNGKey(0)
    k_w, k_data = jax.random.split(key, 2)

    num_feature_ids = 64      # rows of the featurized weight table (vocab)
    dim = 128                 # embedding dim (lane-dense)
    # Ragged bags, one per entity; bag 3 is intentionally empty.
    counts = np.array([3, 1, 4, 0, 5, 2, 6, 1, 3, 2, 4, 5, 1, 2, 3, 6],
                      dtype=np.int32)
    total = int(counts.sum())                      # 48 flat features
    offsets = jnp.asarray(np.concatenate([[0], np.cumsum(counts)]),
                          dtype=jnp.int32)         # (B+1,)

    weight = jax.random.normal(k_w, (num_feature_ids, dim), dtype=jnp.float32)
    data = jax.random.randint(k_data, (total,), 0, num_feature_ids,
                              dtype=jnp.int32)

    # f32 table: exercise both pooling orders (auto / gather-first / histogram)
    # with and without max_norm.
    for max_norm in (None, 1.0):
        for gf in (None, True, False):
            out = featurized_embedding_forward(weight, data, offsets,
                                               max_norm=max_norm,
                                               gather_first=gf)
            out = jax.block_until_ready(out)
            ref = _reference(weight, data, offsets, max_norm=max_norm)
            np.testing.assert_allclose(np.asarray(out), np.asarray(ref),
                                       rtol=1e-4, atol=1e-5)

    # bf16 table: exercises the separate f32-accumulator scratch path and the
    # native-bf16 MXU inputs.
    w_bf16 = weight.astype(jnp.bfloat16)
    out = featurized_embedding_forward(w_bf16, data, offsets, max_norm=None)
    out = jax.block_until_ready(out)
    ref = _reference(w_bf16, data, offsets, max_norm=None)
    np.testing.assert_allclose(np.asarray(out.astype(jnp.float32)),
                               np.asarray(ref.astype(jnp.float32)),
                               rtol=2e-2, atol=2e-2)

    print("KERNEL_OK")
</pallas_src>

<mosaic_0001>
module attributes {stable_mosaic.version = 11 : i64} {
  func.func @_embedding_bag_mean_kernel(%arg0: i32, %arg1: i32, %arg2: memref<64x128xf32, #tpu.memory_space<vmem>>, %arg3: memref<1x2x128xi32, #tpu.memory_space<vmem>>, %arg4: memref<8x1xf32, #tpu.memory_space<vmem>>, %arg5: memref<8x128xf32, #tpu.memory_space<vmem>>) attributes {dimension_semantics = [#tpu.dimension_semantics<parallel>, #tpu.dimension_semantics<arbitrary>], iteration_bounds = array<i64: 2, 1>, scalar_prefetch = 0 : i64, scratch_operands = 0 : i64, tpu.core_type = #tpu.core_type<tc>, window_params = [{pipeline_mode = #tpu.pipeline_mode<synchronous>, transform_indices = @transform_0, window_bounds = array<i64: 64, 128>}, {transform_indices = @transform_1, window_bounds = array<i64: 1, 2, 128>}, {transform_indices = @transform_2, window_bounds = array<i64: 8, 1>}, {transform_indices = @transform_3, window_bounds = array<i64: 8, 128>}]} {
    %c0_i32 = arith.constant 0 : i32
    %0 = arith.cmpi eq, %arg1, %c0_i32 : i32
    %1 = arith.extui %0 : i1 to i32
    %c0_i32_0 = arith.constant 0 : i32
    %2 = arith.cmpi ne, %1, %c0_i32_0 : i32
    scf.if %2 {
      %cst_14 = arith.constant 0.000000e+00 : f32
      %29 = vector.broadcast %cst_14 : f32 to vector<8x128xf32>
      %c0_15 = arith.constant 0 : index
      %c0_16 = arith.constant 0 : index
      %30 = vector.load %arg5[%c0_15, %c0_16] : memref<8x128xf32, #tpu.memory_space<vmem>>, vector<8x128xf32>
      tpu.vector_store %arg5[%c0_15, %c0_16], %29 {strides = array<i32>} : memref<8x128xf32, #tpu.memory_space<vmem>>, vector<8x128xf32>,
    } else {
    }
    %c0 = arith.constant 0 : index
    %c0_1 = arith.constant 0 : index
    %3 = vector.load %arg2[%c0, %c0_1] : memref<64x128xf32, #tpu.memory_space<vmem>>, vector<64x128xf32>
    %c0_2 = arith.constant 0 : index
    %c0_3 = arith.constant 0 : index
    %c0_4 = arith.constant 0 : index
    %4 = vector.load %arg3[%c0_2, %c0_3, %c0_4] : memref<1x2x128xi32, #tpu.memory_space<vmem>>, vector<1x1x128xi32>
    %5 = vector.shape_cast %4 : vector<1x1x128xi32> to vector<1x128xi32>
    %c0_5 = arith.constant 0 : index
    %c1 = arith.constant 1 : index
    %c0_6 = arith.constant 0 : index
    %6 = vector.load %arg3[%c0_5, %c1, %c0_6] : memref<1x2x128xi32, #tpu.memory_space<vmem>>, vector<1x1x128xi32>
    %7 = vector.shape_cast %6 : vector<1x1x128xi32> to vector<1x128xi32>
    %c8_i32 = arith.constant 8 : i32
    %8 = arith.muli %arg0, %c8_i32 : i32
    %9 = tpu.iota {dimensions = array<i32: 0>} : vector<8x128xi32>
    %10 = vector.broadcast %8 : i32 to vector<8x128xi32>
    %11 = arith.addi %9, %10 : vector<8x128xi32>
    %12 = vector.broadcast %7 : vector<1x128xi32> to vector<8x128xi32>
    %13 = arith.cmpi eq, %11, %12 : vector<8x128xi32>
    %14 = arith.extui %13 : vector<8x128xi1> to vector<8x128xi32>
    %15 = arith.sitofp %14 : vector<8x128xi32> to vector<8x128xf32>
    %16 = tpu.iota {dimensions = array<i32: 0>} : vector<64x128xi32>
    %17 = vector.broadcast %5 : vector<1x128xi32> to vector<64x128xi32>
    %18 = arith.cmpi eq, %16, %17 : vector<64x128xi32>
    %19 = arith.extui %18 : vector<64x128xi1> to vector<64x128xi32>
    %20 = arith.sitofp %19 : vector<64x128xi32> to vector<64x128xf32>
    %cst = arith.constant dense<0.000000e+00> : vector<8x64xf32>
    %21 = tpu.matmul %15, %20, %cst {dimension_numbers = #tpu.dot_dimension_numbers<[1], [1], [0], [0], [0, 0, 1, 0], [], []>} : vector<8x128xf32>, vector<64x128xf32>, vector<8x64xf32> -> vector<8x64xf32>
    %c0_7 = arith.constant 0 : index
    %c0_8 = arith.constant 0 : index
    %22 = vector.load %arg5[%c0_7, %c0_8] : memref<8x128xf32, #tpu.memory_space<vmem>>, vector<8x128xf32>
    %cst_9 = arith.constant dense<0.000000e+00> : vector<8x128xf32>
    %23 = tpu.matmul %21, %3, %cst_9 {dimension_numbers = #tpu.dot_dimension_numbers<[1], [0], [0], [1], [0, 0, 1, 1], [], []>} : vector<8x64xf32>, vector<64x128xf32>, vector<8x128xf32> -> vector<8x128xf32>
    %24 = arith.addf %22, %23 : vector<8x128xf32>
    %c0_10 = arith.constant 0 : index
    %c0_11 = arith.constant 0 : index
    %25 = vector.load %arg5[%c0_10, %c0_11] : memref<8x128xf32, #tpu.memory_space<vmem>>, vector<8x128xf32>
    tpu.vector_store %arg5[%c0_10, %c0_11], %24 {strides = array<i32>} : memref<8x128xf32, #tpu.memory_space<vmem>>, vector<8x128xf32>,
    %c0_i32_12 = arith.constant 0 : i32
    %26 = arith.cmpi eq, %arg1, %c0_i32_12 : i32
    %27 = arith.extui %26 : i1 to i32
    %c0_i32_13 = arith.constant 0 : i32
    %28 = arith.cmpi ne, %27, %c0_i32_13 : i32
    scf.if %28 {
      %c0_14 = arith.constant 0 : index
      %c0_15 = arith.constant 0 : index
      %29 = vector.load %arg4[%c0_14, %c0_15] : memref<8x1xf32, #tpu.memory_space<vmem>>, vector<8x1xf32>
      %30 = tpu.reciprocal %29 : vector<8x1xf32> -> vector<8x1xf32>
      %c0_16 = arith.constant 0 : index
      %c0_17 = arith.constant 0 : index
      %31 = vector.load %arg5[%c0_16, %c0_17] : memref<8x128xf32, #tpu.memory_space<vmem>>, vector<8x128xf32>
      %32 = vector.broadcast %30 : vector<8x1xf32> to vector<8x128xf32>
      %33 = arith.mulf %31, %32 : vector<8x128xf32>
      %c0_18 = arith.constant 0 : index
      %c0_19 = arith.constant 0 : index
      %34 = vector.load %arg5[%c0_18, %c0_19] : memref<8x128xf32, #tpu.memory_space<vmem>>, vector<8x128xf32>
      tpu.vector_store %arg5[%c0_18, %c0_19], %33 {strides = array<i32>} : memref<8x128xf32, #tpu.memory_space<vmem>>, vector<8x128xf32>,
    } else {
    }
    return
  }
  func.func @transform_0(%arg0: i32, %arg1: i32) -> (i32, i32) {
    %c0_i32 = arith.constant 0 : i32
    %c0_i32_0 = arith.constant 0 : i32
    %c0_i32_1 = arith.constant 0 : i32
    return %c0_i32, %c0_i32_0 : i32, i32
  }
  func.func @transform_1(%arg0: i32, %arg1: i32) -> (i32, i32, i32) {
    %c0_i32 = arith.constant 0 : i32
    %c0_i32_0 = arith.constant 0 : i32
    %c0_i32_1 = arith.constant 0 : i32
    return %arg1, %c0_i32, %c0_i32_0 : i32, i32, i32
  }
  func.func @transform_2(%arg0: i32, %arg1: i32) -> (i32, i32) {
    %c0_i32 = arith.constant 0 : i32
    %c0_i32_0 = arith.constant 0 : i32
    return %arg0, %c0_i32 : i32, i32
  }
  func.func @transform_3(%arg0: i32, %arg1: i32) -> (i32, i32) {
    %c0_i32 = arith.constant 0 : i32
    %c0_i32_0 = arith.constant 0 : i32
    return %arg0, %c0_i32 : i32, i32
  }
}

module attributes {stable_mosaic.version = 11 : i64} {
  func.func @_embedding_bag_mean_kernel(%arg0: i32, %arg1: i32, %arg2: memref<64x128xf32, #tpu.memory_space<vmem>>, %arg3: memref<1x2x128xi32, #tpu.memory_space<vmem>>, %arg4: memref<8x1xf32, #tpu.memory_space<vmem>>, %arg5: memref<8x128xf32, #tpu.memory_space<vmem>>) attributes {dimension_semantics = [#tpu.dimension_semantics<parallel>, #tpu.dimension_semantics<arbitrary>], iteration_bounds = array<i64: 2, 1>, scalar_prefetch = 0 : i64, scratch_operands = 0 : i64, tpu.core_type = #tpu.core_type<tc>, window_params = [{pipeline_mode = #tpu.pipeline_mode<synchronous>, transform_indices = @transform_0, window_bounds = array<i64: 64, 128>}, {transform_indices = @transform_1, window_bounds = array<i64: 1, 2, 128>}, {transform_indices = @transform_2, window_bounds = array<i64: 8, 1>}, {transform_indices = @transform_3, window_bounds = array<i64: 8, 128>}]} {
    %c0_i32 = arith.constant 0 : i32
    %0 = arith.cmpi eq, %arg1, %c0_i32 : i32
    %1 = arith.extui %0 : i1 to i32
    %c0_i32_0 = arith.constant 0 : i32
    %2 = arith.cmpi ne, %1, %c0_i32_0 : i32
    scf.if %2 {
      %cst_14 = arith.constant 0.000000e+00 : f32
      %29 = vector.broadcast %cst_14 : f32 to vector<8x128xf32>
      %c0_15 = arith.constant 0 : index
      %c0_16 = arith.constant 0 : index
      %30 = vector.load %arg5[%c0_15, %c0_16] : memref<8x128xf32, #tpu.memory_space<vmem>>, vector<8x128xf32>
      tpu.vector_store %arg5[%c0_15, %c0_16], %29 {strides = array<i32>} : memref<8x128xf32, #tpu.memory_space<vmem>>, vector<8x128xf32>,
    } else {
    }
    %c0 = arith.constant 0 : index
    %c0_1 = arith.constant 0 : index
    %3 = vector.load %arg2[%c0, %c0_1] : memref<64x128xf32, #tpu.memory_space<vmem>>, vector<64x128xf32>
    %c0_2 = arith.constant 0 : index
    %c0_3 = arith.constant 0 : index
    %c0_4 = arith.constant 0 : index
    %4 = vector.load %arg3[%c0_2, %c0_3, %c0_4] : memref<1x2x128xi32, #tpu.memory_space<vmem>>, vector<1x1x128xi32>
    %5 = vector.shape_cast %4 : vector<1x1x128xi32> to vector<1x128xi32>
    %c0_5 = arith.constant 0 : index
    %c1 = arith.constant 1 : index
    %c0_6 = arith.constant 0 : index
    %6 = vector.load %arg3[%c0_5, %c1, %c0_6] : memref<1x2x128xi32, #tpu.memory_space<vmem>>, vector<1x1x128xi32>
    %7 = vector.shape_cast %6 : vector<1x1x128xi32> to vector<1x128xi32>
    %c8_i32 = arith.constant 8 : i32
    %8 = arith.muli %arg0, %c8_i32 : i32
    %9 = tpu.iota {dimensions = array<i32: 0>} : vector<8x128xi32>
    %10 = vector.broadcast %8 : i32 to vector<8x128xi32>
    %11 = arith.addi %9, %10 : vector<8x128xi32>
    %12 = vector.broadcast %7 : vector<1x128xi32> to vector<8x128xi32>
    %13 = arith.cmpi eq, %11, %12 : vector<8x128xi32>
    %14 = arith.extui %13 : vector<8x128xi1> to vector<8x128xi32>
    %15 = arith.sitofp %14 : vector<8x128xi32> to vector<8x128xf32>
    %16 = tpu.iota {dimensions = array<i32: 0>} : vector<64x128xi32>
    %17 = vector.broadcast %5 : vector<1x128xi32> to vector<64x128xi32>
    %18 = arith.cmpi eq, %16, %17 : vector<64x128xi32>
    %19 = arith.extui %18 : vector<64x128xi1> to vector<64x128xi32>
    %20 = arith.sitofp %19 : vector<64x128xi32> to vector<64x128xf32>
    %cst = arith.constant dense<0.000000e+00> : vector<8x64xf32>
    %21 = tpu.matmul %15, %20, %cst {dimension_numbers = #tpu.dot_dimension_numbers<[1], [1], [0], [0], [0, 0, 1, 0], [], []>} : vector<8x128xf32>, vector<64x128xf32>, vector<8x64xf32> -> vector<8x64xf32>
    %c0_7 = arith.constant 0 : index
    %c0_8 = arith.constant 0 : index
    %22 = vector.load %arg5[%c0_7, %c0_8] : memref<8x128xf32, #tpu.memory_space<vmem>>, vector<8x128xf32>
    %cst_9 = arith.constant dense<0.000000e+00> : vector<8x128xf32>
    %23 = tpu.matmul %21, %3, %cst_9 {dimension_numbers = #tpu.dot_dimension_numbers<[1], [0], [0], [1], [0, 0, 1, 1], [], []>} : vector<8x64xf32>, vector<64x128xf32>, vector<8x128xf32> -> vector<8x128xf32>
    %24 = arith.addf %22, %23 : vector<8x128xf32>
    %c0_10 = arith.constant 0 : index
    %c0_11 = arith.constant 0 : index
    %25 = vector.load %arg5[%c0_10, %c0_11] : memref<8x128xf32, #tpu.memory_space<vmem>>, vector<8x128xf32>
    tpu.vector_store %arg5[%c0_10, %c0_11], %24 {strides = array<i32>} : memref<8x128xf32, #tpu.memory_space<vmem>>, vector<8x128xf32>,
    %c0_i32_12 = arith.constant 0 : i32
    %26 = arith.cmpi eq, %arg1, %c0_i32_12 : i32
    %27 = arith.extui %26 : i1 to i32
    %c0_i32_13 = arith.constant 0 : i32
    %28 = arith.cmpi ne, %27, %c0_i32_13 : i32
    scf.if %28 {
      %c0_14 = arith.constant 0 : index
      %c0_15 = arith.constant 0 : index
      %29 = vector.load %arg4[%c0_14, %c0_15] : memref<8x1xf32, #tpu.memory_space<vmem>>, vector<8x1xf32>
      %30 = tpu.reciprocal %29 : vector<8x1xf32> -> vector<8x1xf32>
      %c0_16 = arith.constant 0 : index
      %c0_17 = arith.constant 0 : index
      %31 = vector.load %arg5[%c0_16, %c0_17] : memref<8x128xf32, #tpu.memory_space<vmem>>, vector<8x128xf32>
      %32 = vector.broadcast %30 : vector<8x1xf32> to vector<8x128xf32>
      %33 = arith.mulf %31, %32 : vector<8x128xf32>
      %c0_18 = arith.constant 0 : index
      %c0_19 = arith.constant 0 : index
      %34 = vector.load %arg5[%c0_18, %c0_19] : memref<8x128xf32, #tpu.memory_space<vmem>>, vector<8x128xf32>
      tpu.vector_store %arg5[%c0_18, %c0_19], %33 {strides = array<i32>} : memref<8x128xf32, #tpu.memory_space<vmem>>, vector<8x128xf32>,
    } else {
    }
    return
  }
  func.func @transform_0(%arg0: i32, %arg1: i32) -> (i32, i32) {
    %c0_i32 = arith.constant 0 : i32
    %c0_i32_0 = arith.constant 0 : i32
    %c0_i32_1 = arith.constant 0 : i32
    return %c0_i32, %c0_i32_0 : i32, i32
  }
  func.func @transform_1(%arg0: i32, %arg1: i32) -> (i32, i32, i32) {
    %c0_i32 = arith.constant 0 : i32
    %c0_i32_0 = arith.constant 0 : i32
    %c0_i32_1 = arith.constant 0 : i32
    return %arg1, %c0_i32, %c0_i32_0 : i32, i32, i32
  }
  func.func @transform_2(%arg0: i32, %arg1: i32) -> (i32, i32) {
    %c0_i32 = arith.constant 0 : i32
    %c0_i32_0 = arith.constant 0 : i32
    return %arg0, %c0_i32 : i32, i32
  }
  func.func @transform_3(%arg0: i32, %arg1: i32) -> (i32, i32) {
    %c0_i32 = arith.constant 0 : i32
    %c0_i32_0 = arith.constant 0 : i32
    return %arg0, %c0_i32 : i32, i32
  }
}

</mosaic_0001>

<bundles_post_ra>
// kernel: tpu_custom_call.1
= control target key start
LH: loop header
LB: loop body
LE: loop exit
PB: predicated region body
PF: predicated region fallthrough
CT: control target
= control target key end

     0   :  { %8 = vsyncpa [#allocation3], 0  ;;  %s810_s0 = inlined_call_operand.hbm [shape: f32[64,128], index: 0, kind: input, shape index: {}]   ;;  %s811_s1 = inlined_call_operand.vmem [shape: s32[1,2,128], index: 1, kind: input, shape index: {}]   ;;  %s812_s2 = inlined_call_operand.vmem [shape: f32[16,1], index: 2, kind: input, shape index: {}]   ;;  %s813_s3 = inlined_call_operand.hbm [shape: f32[16,128], index: 3, kind: output, shape index: {}]  }
   0x1   :  { %9 = vsyncpa [#allocation4], 0 }
   0x2   :  { %11 = vsyncpa [#allocation4 + $0x1], 0  ;;  %s700_s12 = smov 0   ;;  %s702_s13 = smov 0  }
   0x3   :  { %s704_s14 = smov 0   ;;  %s706_s15 = smov 0  }
   0x4   :  { %s708_s16 = smov 0   ;;  %s710_s17 = smov 0  }
   0x5 LB: > { %s451_s18 = sadd.s32 4294967295, %s673_s17   ;;  %s452_s19 = sadd.s32 4294967294, %s673_s17   ;;  %s673_s17 = sphi %s710_s17, %s17_s17   ;;  %s669_s16 = sphi %s708_s16, %s820_s16   ;;  %s665_s15 = sphi %s706_s15, %s819_s15   ;;  %s661_s14 = sphi %s704_s14, %s818_s14   ;;  %s657_s13 = sphi %s702_s13, %s817_s13   ;;  %s653_s12 = sphi %s700_s12, %s816_s12  }
   0x6   : > { %s29_s20 = sadd.s32 1, %s669_s16  ;;  %s109_s21 = sadd.s32 1, %s661_s14 }
   0x7   : > { %p31_p0 = scmp.ge.s32.totalorder %s29_s20, 2  ;;  %p119_p1 = scmp.ne.s32.totalorder %s661_s14, %s657_s13 }
   0x8   : > { %p120_p2 = scmp.eq.s32.totalorder %s451_s18, 1  ;;  %p125_p3 = scmp.ne.s32.totalorder %s657_s13, %s653_s12 }
   0x9   : > { %s822_s20 = smov (%p31_p0, %s29_s20), 0  ;;  %p126_p5 = scmp.eq.s32.totalorder %s452_s19, 1 }
   0xa   : > { %p740_p4 = por %p120_p2, %p119_p1  ;;  %s106_s23 = ssub.s32 %s669_s16, %s822_s20 }
   0xb   : > { %p453_p6 = scmp.ge.s32.totalorder %s673_s17, 1  ;;  %p107_p7 = scmp.eq.s32.totalorder %s106_s23, 0 }
   0xc   : > { %p747_p8 = por %p126_p5, %p125_p3  ;;  %p133_p9 = scmp.lt.s32.totalorder %s673_s17, 3 }
   0xd   : > { %s753_s25 = scalar_select %p107_p7, %s661_s14, %s109_s21  }
   0xe   : > { %p134_p10 = pnand %p453_p6, %p133_p9  ;;  %p499_p11 = scmp.eq.s32.totalorder %s451_s18, 0 }
   0xf   : > { %s144_s28 = sshll.u32 %s810_s0, 4  ;;  %s675_s29 = smov [#allocation2]   ;;  %s145_s28 = int_to_ptr.hbm [resolvable:$true] %s144_s28 }
  0x10   : > { %p491_p12 = pneg %p134_p10  ;;  %s146_s30 = sshll.u32 %s675_s29, 4  ;;  %s147_s30 = int_to_ptr.vmem [resolvable:$true] %s146_s30 }
  0x11   : > { %s676_s4 = smov 128   ;;  %s677_s5 = smov 8  }
  0x12   : > { %p492_p13 = pnand %p499_p11, %p491_p12  ;;  %176 = sbr.rel (%p134_p10) target bundleno = 319 (0x13f), region = 32 }
  0x14   : > { %494 = dma.hbm_to_vmem [thread:$0]  (!%p492_p13), %s145_s28, 1024, %s147_s30, [#allocation3], %s676_s4, %s676_s4, %s677_s5  }
  0x17   : > { %644 = dma.done.wait (%p499_p11), [#allocation3], 1024  }
  0x18   : > { %646 = vsyncadd (%p499_p11), [#allocation3], 4294966272  ;;  %v228_v0 = vlaneseq  ;;  %v557_v4 = vld [vmem:[%s811_s1] ss:$0 sm:$0xff]  ;;  %v224_v5 = vld [vmem:[#allocation2 + $0x38] sm:$0xff]  ;;  %v678_v6 = vmov 1.0  }
  0x19   : > { %v223_v7 = vld [vmem:[#allocation2 + $0x30] sm:$0xff]  ;;  %301 = vmatpush.msra.mxu1 %v224_v5  ;;  %v222_v9 = vld [vmem:[#allocation2 + $0x28] sm:$0xff]  ;;  %v221_v10 = vld [vmem:[#allocation2 + $0x20] sm:$0xff]  ;;  %s461_s8 = sshll.u32 %s665_s15, 3  ;;  %p208_p0 = scmp.lt.s32.totalorder %s665_s15, 1  ;;  %v679_v23 = vmov 0  }
  0x1a   : > { %v229_v1 = vshrl.u32 %v228_v0, 7  ;;  %v220_v12 = vld [vmem:[#allocation2 + $0x18] sm:$0xff]  ;;  %v219_v13 = vld [vmem:[#allocation2 + $0x10] sm:$0xff]  ;;  %v218_v15 = vld [vmem:[#allocation2 + $0x8] sm:$0xff]  ;;  %v230_v18 = vstv %s461_s8  ;;  %556 = vset.pattern.permute.xlu0 %v679_v23  ;;  %vm289_vm13 = vcmask 523264   ;;  %s201_s26 = sand.u32 1, %s657_s13   ;;  %s352_s30 = scalar_lea.hbm %s813_s3, %s461_s8 }
  0x1b   : > { %302 = vmatpush.msra.mxu1 %v223_v7  ;;  %v558_v20 = vld [vmem:[%s811_s1 + $0x1] ss:$0 sm:$0xff]  ;;  %s209_s11 = scalar_select %p208_p0, %s665_s15, 1 }
  0x1c   : > { %v242_v2 = vadd.s32 56, %v229_v1  ;;  %v241_v3 = vadd.s32 48, %v229_v1  ;;  %v240_v8 = vadd.s32 40, %v229_v1  ;;  %v239_v11 = vadd.s32 32, %v229_v1  ;;  %v217_v22 = vld [vmem:[#allocation2] sm:$0xff]  ;;  %s459_s27 = sshll.u32 %s201_s26, 3 }
  0x1d   : > { %303 = vmatpush.msra.mxu1 %v222_v9  ;;  %v238_v14 = vadd.s32 24, %v229_v1  ;;  %v237_v16 = vadd.s32 16, %v229_v1  ;;  %v236_v17 = vadd.s32 8, %v229_v1  ;;  %v231_v19 = vadd.s32 %v230_v18, %v229_v1  ;;  %s460_s18 = sshll.u32 %s209_s11, 3  ;;  %s203_s4 = scalar_lea.vmem [#allocation5], %s459_s27 }
  0x1e   : > { %vm251_vm0 = vcmp.eq.s32.totalorder %v242_v2, %v557_v4  ;;  %vm250_vm1 = vcmp.eq.s32.totalorder %v241_v3, %v557_v4  ;;  %vm249_vm2 = vcmp.eq.s32.totalorder %v240_v8, %v557_v4  ;;  %vm248_vm3 = vcmp.eq.s32.totalorder %v239_v11, %v557_v4  ;;  %s211_s23 = scalar_lea.vmem %s812_s2, %s460_s18  ;;  %s354_s5 = sshll.u32 %s203_s4, 4  ;;  %s355_s5 = int_to_ptr.vmem [resolvable:$true] %s354_s5 }
  0x1f   : > { %471 = vmatpush.xpose.msk.msra.mxu0 %vm251_vm0, %v678_v6  ;;  %304 = vmatpush.msra.mxu1 %v221_v10  ;;  %vm247_vm4 = vcmp.eq.s32.totalorder %v238_v14, %v557_v4  ;;  %vm246_vm5 = vcmp.eq.s32.totalorder %v237_v16, %v557_v4  ;;  %vm245_vm6 = vcmp.eq.s32.totalorder %v236_v17, %v557_v4  ;;  %v318_v21 = vld [vmem:[%s211_s23] sm:$0xff]  ;;  %s356_s6 = sshll.u32 %s352_s30, 4  ;;  %s342_s7 = scalar_lea.sflag [#allocation4], %s201_s26  ;;  %s357_s6 = int_to_ptr.hbm [resolvable:$true] %s356_s6 }
  0x20   : > { %vm244_vm7 = vcmp.eq.s32.totalorder %v229_v1, %v557_v4  ;;  %vm233_vm8 = vcmp.eq.s32.totalorder %v231_v19, %v558_v20  ;;  %559 = vrcp.f32 %v318_v21  ;;  %v330_v26 = vand.u32 2147483648, %v318_v21  ;;  %s605_s9 = sshra.s32 %s357_s6, 4  ;;  %s611_s8 = scalar_lea.hbm %s813_s3, 16  ;;  %s606_s9 = int_to_ptr.hbm [resolvable:$true] %s605_s9 }
  0x21   : > { %305 = vmatpush.msra.mxu1 %v220_v12  ;;  %vm324_vm9 = vweird.f32 %v318_v21  ;;  %v328_v28 = vand.u32 2147483647, %v318_v21  ;;  %s607_s10 = scalar_lea.hbm %s606_s9, 8  ;;  %p612_p5 = scmp.lt.s32.totalorder %s606_s9, %s813_s3 }
  0x22   : > { %v331_v30 = vor.u32 1.1754944e-38, %v330_v26  ;;  %p608_p1 = scmp.ne.s32.totalorder %s606_s9, %s607_s10  ;;  %p613_p6 = scmp.lt.s32.totalorder %s611_s8, %s607_s10 }
  0x23   : > { %472 = vmatpush.xpose.msk.msra.mxu0 %vm250_vm1, %v678_v6  ;;  %306 = vmatpush.msra.mxu1 %v219_v13  ;;  %vm329_vm12 = vcmp.eq.f32.partialorder %v328_v28, 8.507059e+37 }
  0x24   : > { %p609_p2 = pnand %p608_p1, %p740_p4  ;;  %p614_p7 = por %p613_p6, %p612_p5 }
  0x25   : > { %307 = vmatpush.msra.mxu1 %v218_v15 }
  0x26   : > { %v560_v24 = vpop.eup %559  ;;  %p610_p3 = pneg %p609_p2 }
  0x27   : > { %473 = vmatpush.xpose.msk.msra.mxu0 %vm249_vm2, %v678_v6  ;;  %308 = vmatpush.msra.mxu1 %v217_v22  ;;  %v320_v25 = vmul.f32 %v560_v24, %v318_v21  ;;  %vm325_vm10 = vweird.f32 %v560_v24 }
  0x28   : > { %vm326_vm11 = vmor %vm324_vm9, %vm325_vm10  ;;  %p615_p9 = pnand %p614_p7, %p610_p3 }
  0x29   : > { %v321_v27 = vsub.f32 1.0, %v320_v25 }
  0x2b   : > { %474 = vmatpush.xpose.msk.msra.mxu0 %vm248_vm3, %v678_v6  ;;  %v322_v29 = vmul.f32 %v560_v24, %v321_v27 }
  0x2d   : > { %v323_v31 = vadd.f32 %v560_v24, %v322_v29 }
  0x2f   : > { %475 = vmatpush.xpose.msk.msra.mxu0 %vm247_vm4, %v678_v6  ;;  %v327_v32 = vsel %vm326_vm11, %v560_v24, %v323_v31 }
  0x30   : > { %v332_v33 = vsel %vm329_vm12, %v331_v30, %v327_v32 }
  0x31   : > { %336 = vperm.xlu0 %556, %v332_v33  }
  0x33   : > { %476 = vmatpush.xpose.msk.msra.mxu0 %vm246_vm5, %v678_v6 }
  0x37   : > { %477 = vmatpush.xpose.msk.msra.mxu0 %vm245_vm6, %v678_v6 }
  0x3b   : > { %478 = vmatpush.xpose.msk.msra.mxu0 %vm244_vm7, %v678_v6 }
  0x3e   : > { %479 = vmatmul.msk.f32.vlgmr.msra.gmra.mxu0 %vm233_vm8, %v678_v6 }
  0xa3   : > { %v337_v36 = vpop.permute.xlu0 %336 }
  0xbb   : > { %v285_v34 = vpop.f32.mrf.mxu0 }
  0xbc   : > { %480 = vmatmul.msk.f32.vlgmr.msra.gmra.mxu1 %vm289_vm13, %v285_v34 }
 0x139   : > { %v310_v35 = vpop.f32.mrf.mxu1 }
 0x13a   : > { %v339_v37 = vmul.f32 %v337_v36, %v310_v35 }
 0x13c   : > { %340 = vst [vmem:[%s203_s4] sm:$0xff] %v339_v37 }
 0x13d   : > { %618 = shalt.err (!%p615_p9)
}
 0x13e   : > { %489 = dma.vmem_to_hbm [thread:$0]  (%p740_p4), %s355_s5, 128, %s357_s6, %s342_s7  }
 0x13f PF: > { %p501_p10 = scmp.ge.s32.totalorder %s673_s17, 2  ;;  %s368_s21 = sand.u32 1, %s653_s12  }
 0x140   : > { %s369_s23 = scalar_lea.sflag [#allocation4], %s368_s21 }
 0x141   : > { %p496_p11 = pnand %p501_p10, %p747_p8 }
 0x143   : > { %p497_p12 = pneg %p496_p11 }
 0x145   : > { %648 = dma.done.wait (%p497_p12), %s369_s23, 128  }
 0x146   : > { %650 = vsyncadd (%p497_p12), %s369_s23, 4294967168  ;;  %s17_s17 = sadd.s32 1, %s673_s17   ;;  %s816_s12 = smov %s657_s13 }
 0x147   : > { %p14_p13 = scmp.ge.s32.totalorder %s17_s17, 4   ;;  %s817_s13 = smov %s661_s14 }
 0x148   : > { %s818_s14 = smov %s753_s25  ;;  %s819_s15 = smov %s669_s16 }
 0x149   : > { %s820_s16 = smov %s822_s20  ;;  %16 = sbr.rel (!%p14_p13) target bundleno = 5 (0x5), region = 83 }
 0x14e   :  { %375 = vsyncpa [#allocation3], 1 }
 0x14f   :  { %377 = vsyncpa [#allocation3 + $0x1], 1 }
 0x150   :  { %378 = vsyncpa [#allocation4], 1 }
 0x151   :  { %380 = vsyncpa [#allocation4 + $0x1], 1 }

// kernel: tpu_custom_call.1
= control target key start
LH: loop header
LB: loop body
LE: loop exit
PB: predicated region body
PF: predicated region fallthrough
CT: control target
= control target key end

     0   :  { %8 = vsyncpa [#allocation3], 0  ;;  %s810_s0 = inlined_call_operand.hbm [shape: f32[64,128], index: 0, kind: input, shape index: {}]   ;;  %s811_s1 = inlined_call_operand.vmem [shape: s32[1,2,128], index: 1, kind: input, shape index: {}]   ;;  %s812_s2 = inlined_call_operand.vmem [shape: f32[16,1], index: 2, kind: input, shape index: {}]   ;;  %s813_s3 = inlined_call_operand.hbm [shape: f32[16,128], index: 3, kind: output, shape index: {}]  }
   0x1   :  { %9 = vsyncpa [#allocation4], 0 }
   0x2   :  { %11 = vsyncpa [#allocation4 + $0x1], 0  ;;  %s700_s12 = smov 0   ;;  %s702_s13 = smov 0  }
   0x3   :  { %s704_s14 = smov 0   ;;  %s706_s15 = smov 0  }
   0x4   :  { %s708_s16 = smov 0   ;;  %s710_s17 = smov 0  }
   0x5 LB: > { %s451_s18 = sadd.s32 4294967295, %s673_s17   ;;  %s452_s19 = sadd.s32 4294967294, %s673_s17   ;;  %s673_s17 = sphi %s710_s17, %s17_s17   ;;  %s669_s16 = sphi %s708_s16, %s820_s16   ;;  %s665_s15 = sphi %s706_s15, %s819_s15   ;;  %s661_s14 = sphi %s704_s14, %s818_s14   ;;  %s657_s13 = sphi %s702_s13, %s817_s13   ;;  %s653_s12 = sphi %s700_s12, %s816_s12  }
   0x6   : > { %s29_s20 = sadd.s32 1, %s669_s16  ;;  %s109_s21 = sadd.s32 1, %s661_s14 }
   0x7   : > { %p31_p0 = scmp.ge.s32.totalorder %s29_s20, 2  ;;  %p119_p1 = scmp.ne.s32.totalorder %s661_s14, %s657_s13 }
   0x8   : > { %p120_p2 = scmp.eq.s32.totalorder %s451_s18, 1  ;;  %p125_p3 = scmp.ne.s32.totalorder %s657_s13, %s653_s12 }
   0x9   : > { %s822_s20 = smov (%p31_p0, %s29_s20), 0  ;;  %p126_p5 = scmp.eq.s32.totalorder %s452_s19, 1 }
   0xa   : > { %p740_p4 = por %p120_p2, %p119_p1  ;;  %s106_s23 = ssub.s32 %s669_s16, %s822_s20 }
   0xb   : > { %p453_p6 = scmp.ge.s32.totalorder %s673_s17, 1  ;;  %p107_p7 = scmp.eq.s32.totalorder %s106_s23, 0 }
   0xc   : > { %p747_p8 = por %p126_p5, %p125_p3  ;;  %p133_p9 = scmp.lt.s32.totalorder %s673_s17, 3 }
   0xd   : > { %s753_s25 = scalar_select %p107_p7, %s661_s14, %s109_s21  }
   0xe   : > { %p134_p10 = pnand %p453_p6, %p133_p9  ;;  %p499_p11 = scmp.eq.s32.totalorder %s451_s18, 0 }
   0xf   : > { %s144_s28 = sshll.u32 %s810_s0, 4  ;;  %s675_s29 = smov [#allocation2]   ;;  %s145_s28 = int_to_ptr.hbm [resolvable:$true] %s144_s28 }
  0x10   : > { %p491_p12 = pneg %p134_p10  ;;  %s146_s30 = sshll.u32 %s675_s29, 4  ;;  %s147_s30 = int_to_ptr.vmem [resolvable:$true] %s146_s30 }
  0x11   : > { %s676_s4 = smov 128   ;;  %s677_s5 = smov 8  }
  0x12   : > { %p492_p13 = pnand %p499_p11, %p491_p12  ;;  %176 = sbr.rel (%p134_p10) target bundleno = 319 (0x13f), region = 32 }
  0x14   : > { %494 = dma.hbm_to_vmem [thread:$0]  (!%p492_p13), %s145_s28, 1024, %s147_s30, [#allocation3], %s676_s4, %s676_s4, %s677_s5  }
  0x17   : > { %644 = dma.done.wait (%p499_p11), [#allocation3], 1024  }
  0x18   : > { %646 = vsyncadd (%p499_p11), [#allocation3], 4294966272  ;;  %v228_v0 = vlaneseq  ;;  %v557_v4 = vld [vmem:[%s811_s1] ss:$0 sm:$0xff]  ;;  %v224_v5 = vld [vmem:[#allocation2 + $0x38] sm:$0xff]  ;;  %v678_v6 = vmov 1.0  }
  0x19   : > { %v223_v7 = vld [vmem:[#allocation2 + $0x30] sm:$0xff]  ;;  %301 = vmatpush.msra.mxu1 %v224_v5  ;;  %v222_v9 = vld [vmem:[#allocation2 + $0x28] sm:$0xff]  ;;  %v221_v10 = vld [vmem:[#allocation2 + $0x20] sm:$0xff]  ;;  %s461_s8 = sshll.u32 %s665_s15, 3  ;;  %p208_p0 = scmp.lt.s32.totalorder %s665_s15, 1  ;;  %v679_v23 = vmov 0  }
  0x1a   : > { %v229_v1 = vshrl.u32 %v228_v0, 7  ;;  %v220_v12 = vld [vmem:[#allocation2 + $0x18] sm:$0xff]  ;;  %v219_v13 = vld [vmem:[#allocation2 + $0x10] sm:$0xff]  ;;  %v218_v15 = vld [vmem:[#allocation2 + $0x8] sm:$0xff]  ;;  %v230_v18 = vstv %s461_s8  ;;  %556 = vset.pattern.permute.xlu0 %v679_v23  ;;  %vm289_vm13 = vcmask 523264   ;;  %s201_s26 = sand.u32 1, %s657_s13   ;;  %s352_s30 = scalar_lea.hbm %s813_s3, %s461_s8 }
  0x1b   : > { %302 = vmatpush.msra.mxu1 %v223_v7  ;;  %v558_v20 = vld [vmem:[%s811_s1 + $0x1] ss:$0 sm:$0xff]  ;;  %s209_s11 = scalar_select %p208_p0, %s665_s15, 1 }
  0x1c   : > { %v242_v2 = vadd.s32 56, %v229_v1  ;;  %v241_v3 = vadd.s32 48, %v229_v1  ;;  %v240_v8 = vadd.s32 40, %v229_v1  ;;  %v239_v11 = vadd.s32 32, %v229_v1  ;;  %v217_v22 = vld [vmem:[#allocation2] sm:$0xff]  ;;  %s459_s27 = sshll.u32 %s201_s26, 3 }
  0x1d   : > { %303 = vmatpush.msra.mxu1 %v222_v9  ;;  %v238_v14 = vadd.s32 24, %v229_v1  ;;  %v237_v16 = vadd.s32 16, %v229_v1  ;;  %v236_v17 = vadd.s32 8, %v229_v1  ;;  %v231_v19 = vadd.s32 %v230_v18, %v229_v1  ;;  %s460_s18 = sshll.u32 %s209_s11, 3  ;;  %s203_s4 = scalar_lea.vmem [#allocation5], %s459_s27 }
  0x1e   : > { %vm251_vm0 = vcmp.eq.s32.totalorder %v242_v2, %v557_v4  ;;  %vm250_vm1 = vcmp.eq.s32.totalorder %v241_v3, %v557_v4  ;;  %vm249_vm2 = vcmp.eq.s32.totalorder %v240_v8, %v557_v4  ;;  %vm248_vm3 = vcmp.eq.s32.totalorder %v239_v11, %v557_v4  ;;  %s211_s23 = scalar_lea.vmem %s812_s2, %s460_s18  ;;  %s354_s5 = sshll.u32 %s203_s4, 4  ;;  %s355_s5 = int_to_ptr.vmem [resolvable:$true] %s354_s5 }
  0x1f   : > { %471 = vmatpush.xpose.msk.msra.mxu0 %vm251_vm0, %v678_v6  ;;  %304 = vmatpush.msra.mxu1 %v221_v10  ;;  %vm247_vm4 = vcmp.eq.s32.totalorder %v238_v14, %v557_v4  ;;  %vm246_vm5 = vcmp.eq.s32.totalorder %v237_v16, %v557_v4  ;;  %vm245_vm6 = vcmp.eq.s32.totalorder %v236_v17, %v557_v4  ;;  %v318_v21 = vld [vmem:[%s211_s23] sm:$0xff]  ;;  %s356_s6 = sshll.u32 %s352_s30, 4  ;;  %s342_s7 = scalar_lea.sflag [#allocation4], %s201_s26  ;;  %s357_s6 = int_to_ptr.hbm [resolvable:$true] %s356_s6 }
  0x20   : > { %vm244_vm7 = vcmp.eq.s32.totalorder %v229_v1, %v557_v4  ;;  %vm233_vm8 = vcmp.eq.s32.totalorder %v231_v19, %v558_v20  ;;  %559 = vrcp.f32 %v318_v21  ;;  %v330_v26 = vand.u32 2147483648, %v318_v21  ;;  %s605_s9 = sshra.s32 %s357_s6, 4  ;;  %s611_s8 = scalar_lea.hbm %s813_s3, 16  ;;  %s606_s9 = int_to_ptr.hbm [resolvable:$true] %s605_s9 }
  0x21   : > { %305 = vmatpush.msra.mxu1 %v220_v12  ;;  %vm324_vm9 = vweird.f32 %v318_v21  ;;  %v328_v28 = vand.u32 2147483647, %v318_v21  ;;  %s607_s10 = scalar_lea.hbm %s606_s9, 8  ;;  %p612_p5 = scmp.lt.s32.totalorder %s606_s9, %s813_s3 }
  0x22   : > { %v331_v30 = vor.u32 1.1754944e-38, %v330_v26  ;;  %p608_p1 = scmp.ne.s32.totalorder %s606_s9, %s607_s10  ;;  %p613_p6 = scmp.lt.s32.totalorder %s611_s8, %s607_s10 }
  0x23   : > { %472 = vmatpush.xpose.msk.msra.mxu0 %vm250_vm1, %v678_v6  ;;  %306 = vmatpush.msra.mxu1 %v219_v13  ;;  %vm329_vm12 = vcmp.eq.f32.partialorder %v328_v28, 8.507059e+37 }
  0x24   : > { %p609_p2 = pnand %p608_p1, %p740_p4  ;;  %p614_p7 = por %p613_p6, %p612_p5 }
  0x25   : > { %307 = vmatpush.msra.mxu1 %v218_v15 }
  0x26   : > { %v560_v24 = vpop.eup %559  ;;  %p610_p3 = pneg %p609_p2 }
  0x27   : > { %473 = vmatpush.xpose.msk.msra.mxu0 %vm249_vm2, %v678_v6  ;;  %308 = vmatpush.msra.mxu1 %v217_v22  ;;  %v320_v25 = vmul.f32 %v560_v24, %v318_v21  ;;  %vm325_vm10 = vweird.f32 %v560_v24 }
  0x28   : > { %vm326_vm11 = vmor %vm324_vm9, %vm325_vm10  ;;  %p615_p9 = pnand %p614_p7, %p610_p3 }
  0x29   : > { %v321_v27 = vsub.f32 1.0, %v320_v25 }
  0x2b   : > { %474 = vmatpush.xpose.msk.msra.mxu0 %vm248_vm3, %v678_v6  ;;  %v322_v29 = vmul.f32 %v560_v24, %v321_v27 }
  0x2d   : > { %v323_v31 = vadd.f32 %v560_v24, %v322_v29 }
  0x2f   : > { %475 = vmatpush.xpose.msk.msra.mxu0 %vm247_vm4, %v678_v6  ;;  %v327_v32 = vsel %vm326_vm11, %v560_v24, %v323_v31 }
  0x30   : > { %v332_v33 = vsel %vm329_vm12, %v331_v30, %v327_v32 }
  0x31   : > { %336 = vperm.xlu0 %556, %v332_v33  }
  0x33   : > { %476 = vmatpush.xpose.msk.msra.mxu0 %vm246_vm5, %v678_v6 }
  0x37   : > { %477 = vmatpush.xpose.msk.msra.mxu0 %vm245_vm6, %v678_v6 }
  0x3b   : > { %478 = vmatpush.xpose.msk.msra.mxu0 %vm244_vm7, %v678_v6 }
  0x3e   : > { %479 = vmatmul.msk.f32.vlgmr.msra.gmra.mxu0 %vm233_vm8, %v678_v6 }
  0xa3   : > { %v337_v36 = vpop.permute.xlu0 %336 }
  0xbb   : > { %v285_v34 = vpop.f32.mrf.mxu0 }
  0xbc   : > { %480 = vmatmul.msk.f32.vlgmr.msra.gmra.mxu1 %vm289_vm13, %v285_v34 }
 0x139   : > { %v310_v35 = vpop.f32.mrf.mxu1 }
 0x13a   : > { %v339_v37 = vmul.f32 %v337_v36, %v310_v35 }
 0x13c   : > { %340 = vst [vmem:[%s203_s4] sm:$0xff] %v339_v37 }
 0x13d   : > { %618 = shalt.err (!%p615_p9)
}
 0x13e   : > { %489 = dma.vmem_to_hbm [thread:$0]  (%p740_p4), %s355_s5, 128, %s357_s6, %s342_s7  }
 0x13f PF: > { %p501_p10 = scmp.ge.s32.totalorder %s673_s17, 2  ;;  %s368_s21 = sand.u32 1, %s653_s12  }
 0x140   : > { %s369_s23 = scalar_lea.sflag [#allocation4], %s368_s21 }
 0x141   : > { %p496_p11 = pnand %p501_p10, %p747_p8 }
 0x143   : > { %p497_p12 = pneg %p496_p11 }
 0x145   : > { %648 = dma.done.wait (%p497_p12), %s369_s23, 128  }
 0x146   : > { %650 = vsyncadd (%p497_p12), %s369_s23, 4294967168  ;;  %s17_s17 = sadd.s32 1, %s673_s17   ;;  %s816_s12 = smov %s657_s13 }
 0x147   : > { %p14_p13 = scmp.ge.s32.totalorder %s17_s17, 4   ;;  %s817_s13 = smov %s661_s14 }
 0x148   : > { %s818_s14 = smov %s753_s25  ;;  %s819_s15 = smov %s669_s16 }
 0x149   : > { %s820_s16 = smov %s822_s20  ;;  %16 = sbr.rel (!%p14_p13) target bundleno = 5 (0x5), region = 83 }
 0x14e   :  { %375 = vsyncpa [#allocation3], 1 }
 0x14f   :  { %377 = vsyncpa [#allocation3 + $0x1], 1 }
 0x150   :  { %378 = vsyncpa [#allocation4], 1 }
 0x151   :  { %380 = vsyncpa [#allocation4 + $0x1], 1 }

</bundles_post_ra>
